<compile_context>
chip_gen: v6e
topology: v6e:2x2x1
jax: 0.10.0
libtpu: 0.0.40
codegen_flags: <defaults>
</compile_context>

<pallas_src>
import functools
import math

import jax
import jax.numpy as jnp
from jax.experimental import pallas as pl
from jax.experimental.pallas import tpu as pltpu

LANE = 128     # last-dim vreg width
SUBLANE = 8    # second-to-last-dim vreg width


def _round_up(x, m):
    return ((x + m - 1) // m) * m


def _mlp_kernel(n_linear, valid_out, use_bf16, *refs):
    """Fused MLP forward for one batch tile.

    refs = (x_ref, w0, b0, w1, b1, ..., out_ref)
    All feature dims are padded to multiples of 128; padded output logits are
    masked to -inf before the softmax.
    """
    x_ref = refs[0]
    out_ref = refs[-1]
    param_refs = refs[1:-1]

    h = x_ref[...].astype(jnp.float32)
    for i in range(n_linear):
        w = param_refs[2 * i][...]
        b = param_refs[2 * i + 1][...].astype(jnp.float32)
        if use_bf16:
            lhs = h.astype(jnp.bfloat16)
            rhs = w.astype(jnp.bfloat16)
        else:
            lhs = h
            rhs = w.astype(jnp.float32)
        h = jnp.dot(lhs, rhs, preferred_element_type=jnp.float32) + b

        if i < n_linear - 1:
            # nn.ReLU()
            h = jnp.maximum(h, 0.0)
        else:
            # nn.Softmax(dim=1), numerically stable; padded columns -> -inf.
            if valid_out < h.shape[1]:
                col = jax.lax.broadcasted_iota(jnp.int32, h.shape, 1)
                h = jnp.where(col < valid_out, h, -jnp.inf)
            m = jnp.max(h, axis=1, keepdims=True)
            e = jnp.exp(h - m)
            s = jnp.sum(e, axis=1, keepdims=True)
            h = e * pl.reciprocal(s, approx=True)

    out_ref[...] = h.astype(out_ref.dtype)


def classifier_forward(x, params, *, tb_cap=256, use_bf16=False):
    """Run the fused, batch-tiled MLP Pallas kernel.

    x      : (batch, layer_sizes[0]) float32
    params : list of (W, b) with W: (d_in, d_out), b: (1, d_out) or (d_out,)
    """
    n_linear = len(params)
    dims = [params[0][0].shape[0]] + [w.shape[1] for w, _ in params]
    pdims = [_round_up(d, LANE) for d in dims]  # lane-dense feature dims

    B = x.shape[0]
    # Batch tile: multiple of 8 sublanes, capped so tiles stay VMEM-friendly.
    TB = min(tb_cap, _round_up(B, SUBLANE))
    B_pad = _round_up(B, TB)

    # Zero-pad activations and parameters to the lane-dense shapes.
    x_p = jnp.zeros((B_pad, pdims[0]), x.dtype).at[:B, : dims[0]].set(x)
    flat_params = []
    for i, (w, b) in enumerate(params):
        wp = (
            jnp.zeros((pdims[i], pdims[i + 1]), w.dtype)
            .at[: dims[i], : dims[i + 1]]
            .set(w)
        )
        bp = (
            jnp.zeros((1, pdims[i + 1]), w.dtype)
            .at[:, : dims[i + 1]]
            .set(jnp.reshape(b, (1, -1)))
        )
        flat_params += [wp, bp]

    grid = (B_pad // TB,)

    # Activations: tiled over the batch grid axis. Params: resident (block 0,0).
    in_specs = [pl.BlockSpec((TB, pdims[0]), lambda i: (i, 0))]
    for li in range(n_linear):
        in_specs.append(
            pl.BlockSpec((pdims[li], pdims[li + 1]), lambda i: (0, 0))
        )
        in_specs.append(pl.BlockSpec((1, pdims[li + 1]), lambda i: (0, 0)))
    out_specs = pl.BlockSpec((TB, pdims[-1]), lambda i: (i, 0))

    out_shape = jax.ShapeDtypeStruct((B_pad, pdims[-1]), x.dtype)

    param_bytes = sum(p.size * p.dtype.itemsize for p in flat_params)
    flops = 2 * B_pad * sum(pdims[i] * pdims[i + 1] for i in range(n_linear))
    cost = pl.CostEstimate(
        flops=flops,
        transcendentals=B_pad * pdims[-1],
        bytes_accessed=4 * B_pad * (pdims[0] + pdims[-1]) + param_bytes,
    )

    kernel = functools.partial(_mlp_kernel, n_linear, dims[-1], use_bf16)
    out_full = pl.pallas_call(
        kernel,
        out_shape=out_shape,
        grid=grid,
        in_specs=in_specs,
        out_specs=out_specs,
        compiler_params=pltpu.CompilerParams(
            dimension_semantics=("parallel",),   # v7x: shard batch over 2 TCs
            vmem_limit_bytes=32 * 1024 * 1024,   # safe on v7x's 64 MiB VMEM
        ),
        cost_estimate=cost,
    )(x_p, *flat_params)

    # Slice padding back off (batch rows and padded output lanes).
    return out_full[:B, : dims[-1]]


def init_params(key, layer_sizes):
    """Deterministic init mimicking PyTorch nn.Linear default (U[-k, k], k=1/sqrt(fan_in))."""
    params = []
    for d_in, d_out in zip(layer_sizes[:-1], layer_sizes[1:]):
        key, kw, kb = jax.random.split(key, 3)
        bound = 1.0 / math.sqrt(d_in)
        w = jax.random.uniform(kw, (d_in, d_out), jnp.float32, -bound, bound)
        b = jax.random.uniform(kb, (1, d_out), jnp.float32, -bound, bound)
        params.append((w, b))
    return params


def reference_forward(x, params):
    """Pure-JAX reference for correctness checking."""
    h = x
    n = len(params)
    for i, (w, b) in enumerate(params):
        h = h @ w + jnp.reshape(b, (1, -1))
        if i < n - 1:
            h = jnp.maximum(h, 0.0)
        else:
            h = jax.nn.softmax(h, axis=1)
    return h


if __name__ == "__main__":
    # Classifer(layer_sizes=[32, 64, 16]) on a small batch of flat feature vectors.
    layer_sizes = [32, 64, 16]
    batch = 8

    key = jax.random.PRNGKey(0)
    key, kx = jax.random.split(key)
    x = jax.random.normal(kx, (batch, layer_sizes[0]), jnp.float32)

    params = init_params(key, layer_sizes)

    out = classifier_forward(x, params)
    out = jax.block_until_ready(out)

    ref = reference_forward(x, params)
    assert out.shape == (batch, layer_sizes[-1])
    # approx=True reciprocal on the softmax denominator -> slightly looser tolerance.
    assert jnp.allclose(out, ref, atol=5e-3, rtol=5e-3), "Pallas output mismatch vs JAX reference"
    # Softmax rows must sum to ~1.
    assert jnp.allclose(jnp.sum(out, axis=1), jnp.ones((batch,)), atol=1e-2)

    print("KERNEL_OK")
</pallas_src>

<mosaic_0001>
module attributes {stable_mosaic.version = 11 : i64} {
  func.func @_mlp_kernel(%arg0: i32, %arg1: memref<8x128xf32, #tpu.memory_space<vmem>>, %arg2: memref<128x128xf32, #tpu.memory_space<vmem>>, %arg3: memref<1x128xf32, #tpu.memory_space<vmem>>, %arg4: memref<128x128xf32, #tpu.memory_space<vmem>>, %arg5: memref<1x128xf32, #tpu.memory_space<vmem>>, %arg6: memref<8x128xf32, #tpu.memory_space<vmem>>) attributes {dimension_semantics = [#tpu.dimension_semantics<parallel>], iteration_bounds = array<i64: 1>, scalar_prefetch = 0 : i64, scratch_operands = 0 : i64, tpu.core_type = #tpu.core_type<tc>, window_params = [{transform_indices = @transform_0, window_bounds = array<i64: 8, 128>}, {pipeline_mode = #tpu.pipeline_mode<synchronous>, transform_indices = @transform_1, window_bounds = array<i64: 128, 128>}, {pipeline_mode = #tpu.pipeline_mode<synchronous>, transform_indices = @transform_2, window_bounds = array<i64: 1, 128>}, {pipeline_mode = #tpu.pipeline_mode<synchronous>, transform_indices = @transform_3, window_bounds = array<i64: 128, 128>}, {pipeline_mode = #tpu.pipeline_mode<synchronous>, transform_indices = @transform_4, window_bounds = array<i64: 1, 128>}, {transform_indices = @transform_5, window_bounds = array<i64: 8, 128>}]} {
    %c0 = arith.constant 0 : index
    %c0_0 = arith.constant 0 : index
    %0 = vector.load %arg1[%c0, %c0_0] : memref<8x128xf32, #tpu.memory_space<vmem>>, vector<8x128xf32>
    %c0_1 = arith.constant 0 : index
    %c0_2 = arith.constant 0 : index
    %1 = vector.load %arg2[%c0_1, %c0_2] : memref<128x128xf32, #tpu.memory_space<vmem>>, vector<128x128xf32>
    %c0_3 = arith.constant 0 : index
    %c0_4 = arith.constant 0 : index
    %2 = vector.load %arg3[%c0_3, %c0_4] : memref<1x128xf32, #tpu.memory_space<vmem>>, vector<1x128xf32>
    %cst = arith.constant dense<0.000000e+00> : vector<8x128xf32>
    %3 = tpu.matmul %0, %1, %cst {dimension_numbers = #tpu.dot_dimension_numbers<[1], [0], [0], [1], [0, 0, 1, 1], [], []>} : vector<8x128xf32>, vector<128x128xf32>, vector<8x128xf32> -> vector<8x128xf32>
    %4 = vector.broadcast %2 : vector<1x128xf32> to vector<8x128xf32>
    %5 = arith.addf %3, %4 : vector<8x128xf32>
    %cst_5 = arith.constant 0.000000e+00 : f32
    %6 = vector.broadcast %cst_5 : f32 to vector<8x128xf32>
    %7 = arith.maximumf %5, %6 : vector<8x128xf32>
    %c0_6 = arith.constant 0 : index
    %c0_7 = arith.constant 0 : index
    %8 = vector.load %arg4[%c0_6, %c0_7] : memref<128x128xf32, #tpu.memory_space<vmem>>, vector<128x128xf32>
    %c0_8 = arith.constant 0 : index
    %c0_9 = arith.constant 0 : index
    %9 = vector.load %arg5[%c0_8, %c0_9] : memref<1x128xf32, #tpu.memory_space<vmem>>, vector<1x128xf32>
    %cst_10 = arith.constant dense<0.000000e+00> : vector<8x128xf32>
    %10 = tpu.matmul %7, %8, %cst_10 {dimension_numbers = #tpu.dot_dimension_numbers<[1], [0], [0], [1], [0, 0, 1, 1], [], []>} : vector<8x128xf32>, vector<128x128xf32>, vector<8x128xf32> -> vector<8x128xf32>
    %11 = vector.broadcast %9 : vector<1x128xf32> to vector<8x128xf32>
    %12 = arith.addf %10, %11 : vector<8x128xf32>
    %13 = tpu.iota {dimensions = array<i32: 1>} : vector<8x128xi32>
    %c16_i32 = arith.constant 16 : i32
    %14 = vector.broadcast %c16_i32 : i32 to vector<8x128xi32>
    %15 = arith.cmpi slt, %13, %14 : vector<8x128xi32>
    %cst_11 = arith.constant 0xFF800000 : f32
    %16 = vector.broadcast %cst_11 : f32 to vector<8x128xf32>
    %17 = arith.select %15, %12, %16 : vector<8x128xi1>, vector<8x128xf32>
    %cst_12 = arith.constant dense<0xFF800000> : vector<8xf32>
    %18 = vector.multi_reduction <maximumf>, %17, %cst_12 [1] : vector<8x128xf32> to vector<8xf32>
    %19 = vector.shape_cast %18 : vector<8xf32> to vector<8x1xf32>
    %20 = vector.broadcast %19 : vector<8x1xf32> to vector<8x128xf32>
    %21 = arith.subf %17, %20 : vector<8x128xf32>
    %22 = math.exp %21 : vector<8x128xf32>
    %cst_13 = arith.constant dense<0.000000e+00> : vector<8xf32>
    %23 = vector.multi_reduction <add>, %22, %cst_13 [1] : vector<8x128xf32> to vector<8xf32>
    %24 = vector.shape_cast %23 : vector<8xf32> to vector<8x1xf32>
    %25 = tpu.reciprocal %24 {approx = true} : vector<8x1xf32> -> vector<8x1xf32>
    %26 = vector.broadcast %25 : vector<8x1xf32> to vector<8x128xf32>
    %27 = arith.mulf %22, %26 : vector<8x128xf32>
    %c0_14 = arith.constant 0 : index
    %c0_15 = arith.constant 0 : index
    %28 = vector.load %arg6[%c0_14, %c0_15] : memref<8x128xf32, #tpu.memory_space<vmem>>, vector<8x128xf32>
    tpu.vector_store %arg6[%c0_14, %c0_15], %27 {strides = array<i32>} : memref<8x128xf32, #tpu.memory_space<vmem>>, vector<8x128xf32>,
    return
  }
  func.func @transform_0(%arg0: i32) -> (i32, i32) {
    %c0_i32 = arith.constant 0 : i32
    %c0_i32_0 = arith.constant 0 : i32
    return %arg0, %c0_i32 : i32, i32
  }
  func.func @transform_1(%arg0: i32) -> (i32, i32) {
    %c0_i32 = arith.constant 0 : i32
    %c0_i32_0 = arith.constant 0 : i32
    %c0_i32_1 = arith.constant 0 : i32
    return %c0_i32, %c0_i32_0 : i32, i32
  }
  func.func @transform_2(%arg0: i32) -> (i32, i32) {
    %c0_i32 = arith.constant 0 : i32
    %c0_i32_0 = arith.constant 0 : i32
    %c0_i32_1 = arith.constant 0 : i32
    return %c0_i32, %c0_i32_0 : i32, i32
  }
  func.func @transform_3(%arg0: i32) -> (i32, i32) {
    %c0_i32 = arith.constant 0 : i32
    %c0_i32_0 = arith.constant 0 : i32
    %c0_i32_1 = arith.constant 0 : i32
    return %c0_i32, %c0_i32_0 : i32, i32
  }
  func.func @transform_4(%arg0: i32) -> (i32, i32) {
    %c0_i32 = arith.constant 0 : i32
    %c0_i32_0 = arith.constant 0 : i32
    %c0_i32_1 = arith.constant 0 : i32
    return %c0_i32, %c0_i32_0 : i32, i32
  }
  func.func @transform_5(%arg0: i32) -> (i32, i32) {
    %c0_i32 = arith.constant 0 : i32
    %c0_i32_0 = arith.constant 0 : i32
    return %arg0, %c0_i32 : i32, i32
  }
}

</mosaic_0001>

<bundles_post_ra>
// kernel: tpu_custom_call.1
= control target key start
LH: loop header
LB: loop body
LE: loop exit
PB: predicated region body
PF: predicated region fallthrough
CT: control target
= control target key end

     0   :  { %10 = vsyncpa [#allocation3], 0  ;;  %s572_s0 = inlined_call_operand.hbm [shape: f32[8,128], index: 0, kind: input, shape index: {}]   ;;  %s573_s1 = inlined_call_operand.hbm [shape: f32[128,128], index: 1, kind: input, shape index: {}]   ;;  %s574_s2 = inlined_call_operand.vmem [shape: f32[1,128], index: 2, kind: input, shape index: {}]   ;;  %s575_s3 = inlined_call_operand.hbm [shape: f32[128,128], index: 3, kind: input, shape index: {}]   ;;  %s576_s4 = inlined_call_operand.vmem [shape: f32[1,128], index: 4, kind: input, shape index: {}]   ;;  %s577_s5 = inlined_call_operand.hbm [shape: f32[8,128], index: 5, kind: output, shape index: {}]  }
   0x1   :  { %11 = vsyncpa [#allocation6], 0 }
   0x2   :  { %12 = vsyncpa [#allocation4], 0  ;;  %s482_s18 = smov [#allocation5]  }
   0x3   :  { %s28_s19 = sshll.u32 %s482_s18, 4  ;;  %s29_s19 = int_to_ptr.vmem [resolvable:$true] %s28_s19 }
   0x4   :  { %s404_s20 = scalar_lea.vmem %s29_s19, 2048  ;;  %p409_p1 = scmp.lt.s32.totalorder %s29_s19, %s29_s19 }
   0x5   :  { %p405_p0 = scmp.ne.s32.totalorder %s29_s19, %s404_s20  ;;  %p410_p2 = scmp.lt.s32.totalorder %s404_s20, %s404_s20 }
   0x7   :  { %p411_p3 = por %p410_p2, %p409_p1 }
   0x9   :  { %p412_p4 = pnand %p411_p3, %p405_p0 }
   0xb   :  { %415 = shalt.err (!%p412_p4)
}
   0xc   :  { %s483_s21 = smov 128   ;;  %s484_s22 = smov 8  }
   0xd   :  { %34 = dma.hbm_to_vmem [thread:$0]  %s573_s1, 2048, %s29_s19, [#allocation6], %s483_s21, %s483_s21, %s484_s22  }
   0xe   :  { %s485_s25 = smov [#allocation2]   ;;  %s486_s27 = smov [#allocation7]  }
   0xf   :  { %s19_s26 = sshll.u32 %s485_s25, 4  ;;  %s42_s28 = sshll.u32 %s486_s27, 4  ;;  %s20_s26 = int_to_ptr.vmem [resolvable:$true] %s19_s26  ;;  %s43_s28 = int_to_ptr.vmem [resolvable:$true] %s42_s28 }
  0x10   :  { %s424_s29 = scalar_lea.vmem %s20_s26, 128  ;;  %p429_p6 = scmp.lt.s32.totalorder %s20_s26, %s20_s26 }
  0x11   :  { %p425_p5 = scmp.ne.s32.totalorder %s20_s26, %s424_s29  ;;  %p430_p7 = scmp.lt.s32.totalorder %s424_s29, %s424_s29 }
  0x13   :  { %p431_p8 = por %p430_p7, %p429_p6 }
  0x15   :  { %p432_p9 = pnand %p431_p8, %p425_p5 }
  0x17   :  { %435 = shalt.err (!%p432_p9)
}
  0x18   :  { %22 = dma.hbm_to_vmem [thread:$0]  %s572_s0, 128, %s20_s26, [#allocation3]  }
  0x19   :  { %s444_s7 = scalar_lea.vmem %s43_s28, 2048  ;;  %p449_p11 = scmp.lt.s32.totalorder %s43_s28, %s43_s28 }
  0x1a   :  { %p445_p10 = scmp.ne.s32.totalorder %s43_s28, %s444_s7  ;;  %p450_p12 = scmp.lt.s32.totalorder %s444_s7, %s444_s7 }
  0x1c   :  { %p451_p13 = por %p450_p12, %p449_p11 }
  0x1e   :  { %p452_p0 = pnand %p451_p13, %p445_p10 }
  0x20   :  { %455 = shalt.err (!%p452_p0)
}
  0x21   :  { %48 = dma.hbm_to_vmem [thread:$0]  %s575_s3, 2048, %s43_s28, [#allocation6], %s483_s21, %s483_s21, %s484_s22  }
  0x22   :  { %476 = dma.done.wait [#allocation3], 128  }
  0x23   :  { %477 = vsyncadd [#allocation3], 4294967168 }
  0x24   :  { %478 = dma.done.wait [#allocation6], 4096  }
  0x25   :  { %479 = vsyncadd [#allocation6], 4294963200  ;;  %v487_v0 = vmov 0.0   ;;  %vm488_vm0 = vmmov 0   ;;  %v76_v1 = vld [vmem:[#allocation5 + $0x78] sm:$0xff]  ;;  %v75_v2 = vld [vmem:[#allocation5 + $0x70] sm:$0xff]  ;;  %v248_v39 = vlaneseq }
  0x26   :  { %314 = vmatprep.subr.mxu0 %v487_v0  ;;  %346 = vmatprep.mubr.msk.f32.mxu0 %vm488_vm0, %v487_v0  ;;  %v74_v3 = vld [vmem:[#allocation5 + $0x68] sm:$0xff]  ;;  %v73_v4 = vld [vmem:[#allocation5 + $0x60] sm:$0xff]  ;;  %v170_v5 = vld [vmem:[#allocation7 + $0x78] sm:$0xff] }
  0x27   :  { %349 = vmatprep.subr.mxu1 %v487_v0  ;;  %381 = vmatprep.mubr.msk.f32.mxu1 %vm488_vm0, %v487_v0  ;;  %v72_v6 = vld [vmem:[#allocation5 + $0x58] sm:$0xff]  ;;  %v169_v7 = vld [vmem:[#allocation7 + $0x70] sm:$0xff]  ;;  %v168_v8 = vld [vmem:[#allocation7 + $0x68] sm:$0xff]  ;;  %v249_v40 = vand.u32 127, %v248_v39 }
  0x28   :  { %315 = vmatpush3.msra.mxu0 %v76_v1  ;;  %350 = vmatpush3.msra.mxu1 %v170_v5  ;;  %v71_v9 = vld [vmem:[#allocation5 + $0x50] sm:$0xff]  ;;  %v167_v10 = vld [vmem:[#allocation7 + $0x60] sm:$0xff]  ;;  %v70_v11 = vld [vmem:[#allocation5 + $0x48] sm:$0xff] }
  0x29   :  { %316 = vmatprep.subr.mxu0 %v487_v0  ;;  %351 = vmatprep.subr.mxu1 %v487_v0  ;;  %v166_v12 = vld [vmem:[#allocation7 + $0x58] sm:$0xff]  ;;  %v69_v13 = vld [vmem:[#allocation5 + $0x40] sm:$0xff]  ;;  %v165_v14 = vld [vmem:[#allocation7 + $0x50] sm:$0xff]  ;;  %vm250_vm1 = vcmp.lt.s32.totalorder %v249_v40, 16 }
  0x2a   :  { %317 = vmatpush3.msra.mxu0 %v75_v2  ;;  %352 = vmatpush3.msra.mxu1 %v169_v7  ;;  %v68_v15 = vld [vmem:[#allocation5 + $0x38] sm:$0xff]  ;;  %v164_v16 = vld [vmem:[#allocation7 + $0x48] sm:$0xff]  ;;  %v67_v17 = vld [vmem:[#allocation5 + $0x30] sm:$0xff] }
  0x2b   :  { %318 = vmatprep.subr.mxu0 %v487_v0  ;;  %353 = vmatprep.subr.mxu1 %v487_v0  ;;  %v163_v18 = vld [vmem:[#allocation7 + $0x40] sm:$0xff]  ;;  %v66_v19 = vld [vmem:[#allocation5 + $0x28] sm:$0xff]  ;;  %v162_v20 = vld [vmem:[#allocation7 + $0x38] sm:$0xff] }
  0x2c   :  { %319 = vmatpush3.msra.mxu0 %v74_v3  ;;  %354 = vmatpush3.msra.mxu1 %v168_v8  ;;  %v65_v21 = vld [vmem:[#allocation5 + $0x20] sm:$0xff]  ;;  %v161_v22 = vld [vmem:[#allocation7 + $0x30] sm:$0xff]  ;;  %v64_v23 = vld [vmem:[#allocation5 + $0x18] sm:$0xff] }
  0x2d   :  { %320 = vmatprep.subr.mxu0 %v487_v0  ;;  %355 = vmatprep.subr.mxu1 %v487_v0  ;;  %v160_v24 = vld [vmem:[#allocation7 + $0x28] sm:$0xff]  ;;  %v63_v25 = vld [vmem:[#allocation5 + $0x10] sm:$0xff]  ;;  %v159_v26 = vld [vmem:[#allocation7 + $0x20] sm:$0xff] }
  0x2e   :  { %321 = vmatpush3.msra.mxu0 %v73_v4  ;;  %356 = vmatpush3.msra.mxu1 %v167_v10  ;;  %v62_v27 = vld [vmem:[#allocation5 + $0x8] sm:$0xff]  ;;  %v158_v28 = vld [vmem:[#allocation7 + $0x18] sm:$0xff]  ;;  %v61_v29 = vld [vmem:[#allocation5] sm:$0xff] }
  0x2f   :  { %322 = vmatprep.subr.mxu0 %v487_v0  ;;  %357 = vmatprep.subr.mxu1 %v487_v0  ;;  %v60_v30 = vld [vmem:[#allocation2] sm:$0xff]  ;;  %v157_v31 = vld [vmem:[#allocation7 + $0x10] sm:$0xff]  ;;  %v156_v32 = vld [vmem:[#allocation7 + $0x8] sm:$0xff] }
  0x30   :  { %323 = vmatpush3.msra.mxu0 %v72_v6  ;;  %358 = vmatpush3.msra.mxu1 %v166_v12  ;;  %v155_v33 = vld [vmem:[#allocation7] sm:$0xff]  ;;  %v278_v34 = vld [vmem:[%s574_s2] ss:$0 sm:$0xff]  ;;  %s489_s2 = smov [#allocation8]  }
  0x31   :  { %324 = vmatprep.subr.mxu0 %v487_v0  ;;  %359 = vmatprep.subr.mxu1 %v487_v0  ;;  %v279_v41 = vld [vmem:[%s576_s4] ss:$0 sm:$0xff]  ;;  %s268_s11 = sshll.u32 %s489_s2, 4  ;;  %s269_s11 = int_to_ptr.vmem [resolvable:$true] %s268_s11 }
  0x32   :  { %325 = vmatpush3.msra.mxu0 %v71_v9  ;;  %360 = vmatpush3.msra.mxu1 %v165_v14  ;;  %s456_s4 = scalar_lea.vmem %s269_s11, 128  ;;  %p461_p2 = scmp.lt.s32.totalorder %s269_s11, %s269_s11 }
  0x33   :  { %326 = vmatprep.subr.mxu0 %v487_v0  ;;  %361 = vmatprep.subr.mxu1 %v487_v0  ;;  %p457_p1 = scmp.ne.s32.totalorder %s269_s11, %s456_s4  ;;  %p462_p3 = scmp.lt.s32.totalorder %s456_s4, %s456_s4 }
  0x34   :  { %327 = vmatpush3.msra.mxu0 %v70_v11  ;;  %362 = vmatpush3.msra.mxu1 %v164_v16 }
  0x35   :  { %328 = vmatprep.subr.mxu0 %v487_v0  ;;  %363 = vmatprep.subr.mxu1 %v487_v0  ;;  %p463_p4 = por %p462_p3, %p461_p2 }
  0x36   :  { %329 = vmatpush3.msra.mxu0 %v69_v13  ;;  %364 = vmatpush3.msra.mxu1 %v163_v18 }
  0x37   :  { %330 = vmatprep.subr.mxu0 %v487_v0  ;;  %365 = vmatprep.subr.mxu1 %v487_v0  ;;  %p464_p5 = pnand %p463_p4, %p457_p1 }
  0x38   :  { %331 = vmatpush3.msra.mxu0 %v68_v15  ;;  %366 = vmatpush3.msra.mxu1 %v162_v20 }
  0x39   :  { %332 = vmatprep.subr.mxu0 %v487_v0  ;;  %367 = vmatprep.subr.mxu1 %v487_v0 }
  0x3a   :  { %333 = vmatpush3.msra.mxu0 %v67_v17  ;;  %368 = vmatpush3.msra.mxu1 %v161_v22 }
  0x3b   :  { %334 = vmatprep.subr.mxu0 %v487_v0  ;;  %369 = vmatprep.subr.mxu1 %v487_v0 }
  0x3c   :  { %335 = vmatpush3.msra.mxu0 %v66_v19  ;;  %370 = vmatpush3.msra.mxu1 %v160_v24 }
  0x3d   :  { %336 = vmatprep.subr.mxu0 %v487_v0  ;;  %371 = vmatprep.subr.mxu1 %v487_v0 }
  0x3e   :  { %337 = vmatpush3.msra.mxu0 %v65_v21  ;;  %372 = vmatpush3.msra.mxu1 %v159_v26 }
  0x3f   :  { %338 = vmatprep.subr.mxu0 %v487_v0  ;;  %373 = vmatprep.subr.mxu1 %v487_v0 }
  0x40   :  { %339 = vmatpush3.msra.mxu0 %v64_v23  ;;  %374 = vmatpush3.msra.mxu1 %v158_v28 }
  0x41   :  { %340 = vmatprep.subr.mxu0 %v487_v0  ;;  %375 = vmatprep.subr.mxu1 %v487_v0 }
  0x42   :  { %341 = vmatpush3.msra.mxu0 %v63_v25  ;;  %376 = vmatpush3.msra.mxu1 %v157_v31 }
  0x43   :  { %342 = vmatprep.subr.mxu0 %v487_v0  ;;  %377 = vmatprep.subr.mxu1 %v487_v0 }
  0x44   :  { %343 = vmatpush3.msra.mxu0 %v62_v27  ;;  %378 = vmatpush3.msra.mxu1 %v156_v32 }
  0x45   :  { %344 = vmatprep.subr.mxu0 %v487_v0  ;;  %379 = vmatprep.subr.mxu1 %v487_v0 }
  0x46   :  { %345 = vmatpush3.msra.mxu0 %v61_v29  ;;  %380 = vmatpush3.msra.mxu1 %v155_v33 }
  0x47   :  { %347 = vmatmul.mubr.f32.vlgmr.msra.gmra.mxu0 %v60_v30 }
 0x107   :  { %v150_v35 = vpop.f32.mrf.mxu0 }
 0x108   :  { %v151_v36 = vadd.f32 %v278_v34, %v150_v35 }
 0x109   :  { %v348_v37 = vpop.f32.mrf.mxu0 }
 0x10a   :  { %v154_v38 = vmax.f32 %v151_v36, 0.0 }
 0x10c   :  { %382 = vmatmul.mubr.f32.vlgmr.msra.gmra.mxu1 %v154_v38 }
 0x1cc   :  { %v244_v42 = vpop.f32.mrf.mxu1 }
 0x1cd   :  { %v245_v43 = vadd.f32 %v279_v41, %v244_v42 }
 0x1ce   :  { %v383_v44 = vpop.f32.mrf.mxu1 }
 0x1cf   :  { %v251_v45 = vsel %vm250_vm1, %v245_v43, -inf }
 0x1d0   :  { %252 = vmax.xlane.f32.xlu0 %v251_v45 }
 0x259   :  { %v253_v46 = vpop.xlane.xlu0 %252 }
 0x25a   :  { %v254_v47 = vsub.f32 %v251_v45, %v253_v46 }
 0x25c   :  { %v255_v48 = vmul.f32 1.442695, %v254_v47 }
 0x25e   :  { %392 = vpow2.f32 %v255_v48 }
 0x26b   :  { %v393_v49 = vpop.eup %392 }
 0x26c   :  { %257 = vadd.xlane.f32.xlu0 %v393_v49 }
 0x2f5   :  { %v258_v50 = vpop.xlane.xlu0 %257 }
 0x2f6   :  { %394 = vrcp.f32 %v258_v50 }
 0x303   :  { %v395_v51 = vpop.eup %394 }
 0x304   :  { %v260_v52 = vmul.f32 %v395_v51, %v393_v49 }
 0x306   :  { %261 = vst [vmem:[#allocation8] sm:$0xff] %v260_v52 }
 0x307   :  { %467 = shalt.err (!%p464_p5)
}
 0x308   :  { %271 = dma.vmem_to_hbm [thread:$0]  %s269_s11, 128, %s577_s5, [#allocation4]  }
 0x309   :  { %480 = dma.done.wait [#allocation4], 128  }
 0x30a   :  { %481 = vsyncadd [#allocation4], 4294967168 }
 0x30b   :  { %275 = vsyncpa [#allocation3], 1 }
 0x30c   :  { %276 = vsyncpa [#allocation6], 1 }
 0x30d   :  { %277 = vsyncpa [#allocation4], 1 }

</bundles_post_ra>
